<compile_context>
chip_gen: v6e
topology: v6e:2x2x1
jax: 0.10.0
libtpu: 0.0.40
codegen_flags: <defaults>
</compile_context>

<pallas_src>
import math

import jax
import jax.numpy as jnp
from jax.experimental import pallas as pl
from jax.experimental.pallas import tpu as pltpu


def _layer_scale_kernel(x_ref, gamma_ref, o_ref):
    # x_ref:     (TILE_ROWS, W) block of (possibly folded) tokens
    # gamma_ref: (1, W) f32, broadcast along rows
    x = x_ref[...].astype(jnp.float32)
    o_ref[...] = (x * gamma_ref[...]).astype(o_ref.dtype)


def _round_up(a, b):
    return -(-a // b) * b


def layer_scale(x, gamma, *, target_block_bytes=4 << 20, donate_x=False):
    """x: (..., D), gamma: (D,) -> x * gamma (broadcast over trailing dim)."""
    orig_shape = x.shape
    D = orig_shape[-1]
    rows = math.prod(orig_shape[:-1])
    if rows == 0 or D == 0:
        return x

    itemsize = jnp.dtype(x.dtype).itemsize
    sublane = {4: 8, 2: 16, 1: 32}.get(itemsize, 8)

    # --- lane-dense fold (pad-free): only when k divides rows exactly -------
    # Fold k consecutive rows into one row of width W = k*D so stores are
    # full-width vst instead of masked vst.msk when D % 128 != 0.
    k = 1
    if D % 128 != 0:
        k0 = 128 // math.gcd(D, 128)          # minimal k with (k*D) % 128 == 0
        if rows % k0 == 0:
            k = k0
            while k * D < 512 and rows % (2 * k) == 0:
                k *= 2                         # widen toward >=512 lanes, still pad-free
    W = k * D
    rows_folded = rows // k if k > 1 else rows  # exact when k > 1

    # --- tile size: ~target_block_bytes per x block, sublane-aligned --------
    tile_rows = max(sublane,
                    (target_block_bytes // max(W * itemsize, 1)) // sublane * sublane)
    if tile_rows >= rows_folded:
        if rows_folded > sublane:
            # Split into >=2 grid steps so the "parallel" axis can shard
            # across both v7x TensorCores.
            tile_rows = _round_up(-(-rows_folded // 2), sublane)
        else:
            tile_rows = rows_folded            # single tiny block (full row dim)

    grid = (pl.cdiv(rows_folded, tile_rows),)  # partial last block handled by Pallas

    # --- wrapper-side layout plumbing: contiguous reshapes only, no pad -----
    xw = x.reshape(rows_folded, W)
    gamma_f32 = gamma.astype(jnp.float32).reshape(1, D)
    gamma_w = jnp.tile(gamma_f32, (1, k)) if k > 1 else gamma_f32   # (1, W)

    call_kwargs = {}
    if donate_x:
        # Output reuses x's HBM buffer (emulates the module's inplace=True).
        call_kwargs["input_output_aliases"] = {0: 0}

    out_w = pl.pallas_call(
        _layer_scale_kernel,
        out_shape=jax.ShapeDtypeStruct((rows_folded, W), x.dtype),
        grid_spec=pltpu.PrefetchScalarGridSpec(
            num_scalar_prefetch=0,
            grid=grid,
            in_specs=[
                pl.BlockSpec((tile_rows, W), lambda i: (i, 0)),
                pl.BlockSpec((1, W), lambda i: (0, 0)),
            ],
            out_specs=pl.BlockSpec((tile_rows, W), lambda i: (i, 0)),
        ),
        compiler_params=pltpu.CompilerParams(
            dimension_semantics=("parallel",),
            vmem_limit_bytes=48 << 20,
        ),
        **call_kwargs,
    )(xw, gamma_w)

    return out_w.reshape(orig_shape)


if __name__ == "__main__":
    # Module __init__: gamma = init_values * ones(dim)
    dim = 32
    init_values = 1e-5
    gamma = init_values * jnp.ones((dim,), dtype=jnp.float32)

    # Example input: (batch=2, seq=8, hidden=32)  -> folded lane-dense path
    key = jax.random.PRNGKey(0)
    x = jax.random.normal(key, (2, 8, dim), dtype=jnp.float32)

    out = layer_scale(x, gamma)
    out = jax.block_until_ready(out)

    ref = x * gamma
    assert out.shape == x.shape and out.dtype == x.dtype
    assert jnp.allclose(out, ref, atol=1e-6, rtol=1e-6)

    # Second check: odd row count + D not a multiple of 128 -> un-folded path
    # with a partial (masked) trailing block and NO wrapper pad/slice copies.
    dim2 = 48
    gamma2 = init_values * jnp.ones((dim2,), dtype=jnp.float32)
    x2 = jax.random.normal(jax.random.PRNGKey(0), (17, dim2), dtype=jnp.float32)
    out2 = jax.block_until_ready(layer_scale(x2, gamma2))
    assert out2.shape == x2.shape and out2.dtype == x2.dtype
    assert jnp.allclose(out2, x2 * gamma2, atol=1e-6, rtol=1e-6)

    print("KERNEL_OK")
</pallas_src>

<mosaic_0001>
module attributes {stable_mosaic.version = 11 : i64} {
  func.func @_layer_scale_kernel(%arg0: i32, %arg1: memref<1x512xf32, #tpu.memory_space<vmem>>, %arg2: memref<1x512xf32, #tpu.memory_space<vmem>>, %arg3: memref<1x512xf32, #tpu.memory_space<vmem>>) attributes {dimension_semantics = [#tpu.dimension_semantics<parallel>], iteration_bounds = array<i64: 1>, scalar_prefetch = 0 : i64, scratch_operands = 0 : i64, tpu.core_type = #tpu.core_type<tc>, window_params = [{transform_indices = @transform_0, window_bounds = array<i64: 1, 512>}, {pipeline_mode = #tpu.pipeline_mode<synchronous>, transform_indices = @transform_1, window_bounds = array<i64: 1, 512>}, {transform_indices = @transform_2, window_bounds = array<i64: 1, 512>}]} {
    %c0 = arith.constant 0 : index
    %c0_0 = arith.constant 0 : index
    %0 = vector.load %arg1[%c0, %c0_0] : memref<1x512xf32, #tpu.memory_space<vmem>>, vector<1x512xf32>
    %c0_1 = arith.constant 0 : index
    %c0_2 = arith.constant 0 : index
    %1 = vector.load %arg2[%c0_1, %c0_2] : memref<1x512xf32, #tpu.memory_space<vmem>>, vector<1x512xf32>
    %2 = arith.mulf %0, %1 : vector<1x512xf32>
    %c0_3 = arith.constant 0 : index
    %c0_4 = arith.constant 0 : index
    %3 = vector.load %arg3[%c0_3, %c0_4] : memref<1x512xf32, #tpu.memory_space<vmem>>, vector<1x512xf32>
    tpu.vector_store %arg3[%c0_3, %c0_4], %2 {strides = array<i32>} : memref<1x512xf32, #tpu.memory_space<vmem>>, vector<1x512xf32>,
    return
  }
  func.func @transform_0(%arg0: i32) -> (i32, i32) {
    %c0_i32 = arith.constant 0 : i32
    %c0_i32_0 = arith.constant 0 : i32
    return %arg0, %c0_i32 : i32, i32
  }
  func.func @transform_1(%arg0: i32) -> (i32, i32) {
    %c0_i32 = arith.constant 0 : i32
    %c0_i32_0 = arith.constant 0 : i32
    %c0_i32_1 = arith.constant 0 : i32
    return %c0_i32, %c0_i32_0 : i32, i32
  }
  func.func @transform_2(%arg0: i32) -> (i32, i32) {
    %c0_i32 = arith.constant 0 : i32
    %c0_i32_0 = arith.constant 0 : i32
    return %arg0, %c0_i32 : i32, i32
  }
}

</mosaic_0001>

<bundles_post_ra>
// kernel: tpu_custom_call.1
= control target key start
LH: loop header
LB: loop body
LE: loop exit
PB: predicated region body
PF: predicated region fallthrough
CT: control target
= control target key end

     0   :  { %7 = vsyncpa [#allocation3], 0  ;;  %s156_s0 = inlined_call_operand.hbm [shape: f32[1,512], index: 0, kind: input, shape index: {}]   ;;  %s157_s1 = inlined_call_operand.hbm [shape: f32[1,512], index: 1, kind: input, shape index: {}]   ;;  %s158_s2 = inlined_call_operand.hbm [shape: f32[1,512], index: 2, kind: output, shape index: {}]  }
   0x1   :  { %8 = vsyncpa [#allocation6], 0 }
   0x2   :  { %9 = vsyncpa [#allocation4], 0  ;;  %s129_s9 = smov [#allocation2]   ;;  %s130_s11 = smov [#allocation5]  }
   0x3   :  { %s16_s10 = sshll.u32 %s129_s9, 4  ;;  %s26_s12 = sshll.u32 %s130_s11, 4  ;;  %s17_s10 = int_to_ptr.vmem [resolvable:$true] %s16_s10  ;;  %s27_s12 = int_to_ptr.vmem [resolvable:$true] %s26_s12 }
   0x4   :  { %s71_s13 = scalar_lea.vmem %s17_s10, 64  ;;  %p76_p1 = scmp.lt.s32.totalorder %s17_s10, %s17_s10 }
   0x5   :  { %p72_p0 = scmp.ne.s32.totalorder %s17_s10, %s71_s13  ;;  %p77_p2 = scmp.lt.s32.totalorder %s71_s13, %s71_s13 }
   0x7   :  { %p78_p3 = por %p77_p2, %p76_p1 }
   0x9   :  { %p79_p4 = pnand %p78_p3, %p72_p0 }
   0xb   :  { %82 = shalt.err (!%p79_p4)
}
   0xc   :  { %19 = dma.hbm_to_vmem [thread:$0]  %s156_s0, 64, %s17_s10, [#allocation3]  }
   0xd   :  { %s91_s16 = scalar_lea.vmem %s27_s12, 64  ;;  %p96_p6 = scmp.lt.s32.totalorder %s27_s12, %s27_s12 }
   0xe   :  { %p92_p5 = scmp.ne.s32.totalorder %s27_s12, %s91_s16  ;;  %p97_p7 = scmp.lt.s32.totalorder %s91_s16, %s91_s16 }
  0x10   :  { %p98_p8 = por %p97_p7, %p96_p6 }
  0x12   :  { %p99_p9 = pnand %p98_p8, %p92_p5 }
  0x14   :  { %102 = shalt.err (!%p99_p9)
}
  0x15   :  { %29 = dma.hbm_to_vmem [thread:$0]  %s157_s1, 64, %s27_s12, [#allocation6]  }
  0x16   :  { %123 = dma.done.wait [#allocation3], 64  }
  0x17   :  { %124 = vsyncadd [#allocation3], 4294967232 }
  0x18   :  { %125 = dma.done.wait [#allocation6], 64  }
  0x19   :  { %126 = vsyncadd [#allocation6], 4294967232  ;;  %v39_v0 = vlaneseq  ;;  %s131_s19 = smov [#allocation7]   ;;  %v36_v1 = vld [vmem:[#allocation2] sm:$0xf] }
  0x1a   :  { %s50_s20 = sshll.u32 %s131_s19, 4  ;;  %v37_v2 = vld [vmem:[#allocation5] sm:$0xf]  ;;  %s51_s20 = int_to_ptr.vmem [resolvable:$true] %s50_s20 }
  0x1b   :  { %vm41_vm0 = vcmp.lt.s32.totalorder %v39_v0, 512  ;;  %v38_v3 = vmul.f32 %v37_v2, %v36_v1  ;;  %s103_s0 = scalar_lea.vmem %s51_s20, 64  ;;  %p108_p11 = scmp.lt.s32.totalorder %s51_s20, %s51_s20 }
  0x1c   :  { %p104_p10 = scmp.ne.s32.totalorder %s51_s20, %s103_s0  ;;  %p109_p12 = scmp.lt.s32.totalorder %s103_s0, %s103_s0 }
  0x1d   :  { %43 = vst.msk [vmem:[#allocation7] sm:$0xf] %vm41_vm0, %v38_v3 }
  0x1e   :  { %p110_p13 = por %p109_p12, %p108_p11 }
  0x20   :  { %p111_p0 = pnand %p110_p13, %p104_p10 }
  0x22   :  { %114 = shalt.err (!%p111_p0)
}
  0x23   :  { %53 = dma.vmem_to_hbm [thread:$0]  %s51_s20, 64, %s158_s2, [#allocation4]  }
  0x24   :  { %127 = dma.done.wait [#allocation4], 64  }
  0x25   :  { %128 = vsyncadd [#allocation4], 4294967232 }
  0x26   :  { %57 = vsyncpa [#allocation3], 1 }
  0x27   :  { %58 = vsyncpa [#allocation6], 1 }
  0x28   :  { %59 = vsyncpa [#allocation4], 1 }

</bundles_post_ra>
